<compile_context>
chip_gen: v5e
topology: v5e:2x2
jax: 0.10.0
libtpu: 0.0.40
codegen_flags: <defaults>
</compile_context>

<pallas_src>
import functools

import jax
import jax.numpy as jnp
from jax import lax
from jax.experimental import pallas as pl
from jax.experimental.pallas import tpu as pltpu


def _ds(start, size, stride):
    """pl.ds that omits the stride when it is 1."""
    return pl.ds(start, size) if stride == 1 else pl.ds(start, size, stride)


def _round_up(x, m):
    return ((x + m - 1) // m) * m


def _pool_taps(n_in, n_out, k, s, p):
    """Per-tap (dst_lo, count, src_start) for a 1-D max pool.

    Tap j contributes input index i*s - p + j to output index i; each tap is
    restricted to the output range where that index is in [0, n_in).  The first
    returned tap covers the whole output range (used as the initializer).
    """
    taps = []
    for j in range(k):
        lo = max(0, -((j - p) // s) if (p - j) > 0 else 0)
        lo = max(0, -(-(p - j) // s))                 # ceil((p - j) / s)
        hi = min(n_out - 1, (n_in - 1 + p - j) // s)
        if lo > hi:
            continue
        taps.append((lo, hi - lo + 1, lo * s - p + j))
    full = [t for t in taps if t[0] == 0 and t[1] == n_out]
    assert full, "max-pool (k, s, p) combo has no output-covering tap"
    first = full[0]
    rest = [t for t in taps if t is not first]
    return [first] + rest


def tokenizer_kernel(a_ref, w_ref, o_ref, ys_ref, hb_ref, *,
                     Btile, Hout, Wout, Cout, Hp, Wp, pool_s, h_taps, w_taps):
    """One tile of `Btile` images per grid step.

    a_ref : (Btile*Hout*Wout, Kc)      bf16 im2col patches (UNPADDED contraction)
    w_ref : (Kc, Cout)                 bf16 conv weights, (kh, kw, cin) flattened
    o_ref : (Btile, Hp, Wp, Cout)      f32 pooled output block
    ys_ref: (Btile, Hout, Wout, Cout)  f32 conv-output scratch
    hb_ref: (Btile, Hp, Wout, Cout)    f32 H-pooled intermediate scratch
    """
    # ---- convolution as ONE im2col matmul on the MXU (bf16 x bf16 -> f32 acc)
    y = jnp.dot(a_ref[...], w_ref[...], preferred_element_type=jnp.float32)
    ys_ref[...] = y.reshape(Btile, Hout, Wout, Cout)

    # ---- separable max pool, H pass (strided reads along a major dim).
    # Each tap is (dst_lo, count, src_start); tap 0 covers every pooled row, the
    # rest fold in with sub-range read-modify-write maxima.  Window positions
    # that fall outside the conv output are simply excluded by the tap ranges,
    # so no -inf border is ever materialized or stored.
    for i, (lo, cnt, src) in enumerate(h_taps):
        win = ys_ref[:, _ds(src, cnt, pool_s), :, :]
        if i == 0:
            hb_ref[...] = win
        else:
            hb_ref[:, lo:lo + cnt, :, :] = jnp.maximum(
                hb_ref[:, lo:lo + cnt, :, :], win)

    # ---- W pass (strided sublane reads of the halved intermediate),
    #      accumulated straight into the output block (no extra staging copy).
    for i, (lo, cnt, src) in enumerate(w_taps):
        win = hb_ref[:, :, _ds(src, cnt, pool_s), :]
        if i == 0:
            o_ref[...] = win
        else:
            o_ref[:, :, lo:lo + cnt, :] = jnp.maximum(
                o_ref[:, :, lo:lo + cnt, :], win)


def _vmem_block_bytes(bt, Lc, Hout, Wout, Hp, Wp, Cout, Kc):
    """Per-step VMEM footprint estimate with native lane/sublane padding."""
    lane_f32 = _round_up(Cout, 128)
    a = 2 * _round_up(bt * Lc, 16) * _round_up(Kc, 128) * 2      # 2x-buffered bf16 A
    w = 2 * _round_up(Kc, 16) * _round_up(Cout, 128) * 2         # 2x-buffered weights
    out = 2 * bt * Hp * _round_up(Wp, 8) * lane_f32 * 4          # 2x-buffered f32 out
    ys = bt * Hout * _round_up(Wout, 8) * lane_f32 * 4           # conv scratch
    hb = bt * Hp * _round_up(Wout, 8) * lane_f32 * 4             # H-pooled scratch
    dot_tmp = _round_up(bt * Lc, 8) * lane_f32 * 4               # matmul result temp
    return a + w + out + ys + hb + dot_tmp


def _pick_batch_tile(B, Lc, est_fn, vmem_budget=36 * 2**20, target_rows=2048):
    """Largest useful divisor of B: fits the VMEM budget, keeps >=2 grid steps
    when possible, and prefers the smallest tile reaching ~2048 matmul rows."""
    divisors = [d for d in range(1, B + 1) if B % d == 0]
    cand = [d for d in divisors if B // d >= 2] or [1]
    fit = [d for d in cand if est_fn(d) <= vmem_budget] or [1]
    for d in fit:
        if d * Lc >= target_rows:
            return d
    return fit[-1]


@functools.partial(jax.jit, static_argnames=(
    "kernel_size", "stride", "padding", "pool_k", "pool_s", "pool_p",
    "batch_tile"))
def tokenizer_forward(x_nchw, w_hwio, *, kernel_size, stride, padding,
                      pool_k=3, pool_s=2, pool_p=1, batch_tile=None):
    B, Cin, H, W = x_nchw.shape
    K = kernel_size
    Cout = w_hwio.shape[-1]
    assert w_hwio.shape == (K, K, Cin, Cout)

    Hout = (H + 2 * padding - K) // stride + 1
    Wout = (W + 2 * padding - K) // stride + 1
    Hp = (Hout + 2 * pool_p - pool_k) // pool_s + 1
    Wp = (Wout + 2 * pool_p - pool_k) // pool_s + 1
    L = Hp * Wp
    Lc = Hout * Wout
    Kc = K * K * Cin                     # unpadded contraction dim (27 for defaults)

    est = lambda bt: _vmem_block_bytes(bt, Lc, Hout, Wout, Hp, Wp, Cout, Kc)
    if batch_tile is None:
        batch_tile = _pick_batch_tile(B, Lc, est)
    Btile = batch_tile
    assert B % Btile == 0
    nT = B // Btile

    # ---- wrapper-side layout plumbing: NCHW -> NHWC, spatial pad, im2col, bf16
    # (no contraction-dim padding: the HBM A stream stays Kc-wide).
    x = jnp.transpose(x_nchw, (0, 2, 3, 1)).astype(jnp.float32)
    x = jnp.pad(x, ((0, 0), (padding, padding), (padding, padding), (0, 0)))

    taps = []
    for kh in range(K):
        for kw in range(K):
            taps.append(x[:, kh:kh + stride * Hout:stride,
                          kw:kw + stride * Wout:stride, :])
    patches = jnp.stack(taps, axis=3)                     # (B, Hout, Wout, K*K, Cin)
    patches = patches.reshape(B, Lc, Kc)                  # (kh, kw, cin) flattening
    a = patches.astype(jnp.bfloat16).reshape(nT, Btile * Lc, Kc)

    w_mat = w_hwio.reshape(Kc, Cout).astype(jnp.bfloat16)  # (kh, kw, cin) flattening

    h_taps = tuple(_pool_taps(Hout, Hp, pool_k, pool_s, pool_p))
    w_taps = tuple(_pool_taps(Wout, Wp, pool_k, pool_s, pool_p))

    kernel = functools.partial(
        tokenizer_kernel,
        Btile=Btile, Hout=Hout, Wout=Wout, Cout=Cout,
        Hp=Hp, Wp=Wp, pool_s=pool_s, h_taps=h_taps, w_taps=w_taps)

    vmem_limit = int(min(max(32 * 2**20, est(Btile) * 3 // 2 + 4 * 2**20),
                         100 * 2**20))

    out = pl.pallas_call(
        kernel,
        out_shape=jax.ShapeDtypeStruct((nT, Btile, Hp, Wp, Cout), jnp.float32),
        grid_spec=pltpu.PrefetchScalarGridSpec(
            num_scalar_prefetch=0,
            grid=(nT,),
            in_specs=[
                pl.BlockSpec((None, Btile * Lc, Kc), lambda t: (t, 0, 0)),
                pl.BlockSpec((Kc, Cout), lambda t: (0, 0)),
            ],
            out_specs=pl.BlockSpec((None, Btile, Hp, Wp, Cout),
                                   lambda t: (t, 0, 0, 0, 0)),
            scratch_shapes=[
                pltpu.VMEM((Btile, Hout, Wout, Cout), jnp.float32),
                pltpu.VMEM((Btile, Hp, Wout, Cout), jnp.float32),
            ]),
        compiler_params=pltpu.CompilerParams(
            dimension_semantics=("parallel",),
            vmem_limit_bytes=vmem_limit),
    )(a, w_mat)
    return out.reshape(B, L, Cout)


def reference_forward(x_nchw, w_hwio, *, stride, padding, pool_k, pool_s, pool_p):
    """Pure-JAX reference matching the PyTorch module (same bf16 operands)."""
    w_oihw = jnp.transpose(w_hwio, (3, 2, 0, 1))  # (Cout, Cin, K, K)
    y = lax.conv_general_dilated(
        x_nchw.astype(jnp.bfloat16), w_oihw.astype(jnp.bfloat16),
        window_strides=(stride, stride),
        padding=[(padding, padding), (padding, padding)],
        dimension_numbers=('NCHW', 'OIHW', 'NCHW'),
        preferred_element_type=jnp.float32)
    y = lax.reduce_window(
        y, -jnp.inf, lax.max,
        window_dimensions=(1, 1, pool_k, pool_k),
        window_strides=(1, 1, pool_s, pool_s),
        padding=[(0, 0), (0, 0), (pool_p, pool_p), (pool_p, pool_p)])
    B, C, Hp, Wp = y.shape
    return jnp.transpose(y.reshape(B, C, Hp * Wp), (0, 2, 1))


if __name__ == "__main__":
    # Module hyperparameters (defaults: 1 conv layer, 3 -> 64 channels, no bias,
    # no activation, maxpool 3/2/1).
    kernel_size, stride, padding = 3, 1, 1
    pool_k, pool_s, pool_p = 3, 2, 1
    B, Cin, H, W = 2, 3, 16, 16
    Cout = 64

    key = jax.random.PRNGKey(0)
    kx, kw = jax.random.split(key)

    x = jax.random.normal(kx, (B, Cin, H, W), dtype=jnp.float32)

    # kaiming_normal_ on the conv weight: std = sqrt(2 / fan_in), fan_in = Cin*K*K
    fan_in = Cin * kernel_size * kernel_size
    std = (2.0 / fan_in) ** 0.5
    w_oihw = std * jax.random.normal(kw, (Cout, Cin, kernel_size, kernel_size),
                                     dtype=jnp.float32)
    w_hwio = jnp.transpose(w_oihw, (2, 3, 1, 0))  # (K, K, Cin, Cout)

    out = tokenizer_forward(x, w_hwio,
                            kernel_size=kernel_size, stride=stride,
                            padding=padding, pool_k=pool_k, pool_s=pool_s,
                            pool_p=pool_p)
    out = jax.block_until_ready(out)

    ref = reference_forward(x, w_hwio, stride=stride, padding=padding,
                            pool_k=pool_k, pool_s=pool_s, pool_p=pool_p)
    assert out.shape == (B, 8 * 8, Cout), out.shape
    assert jnp.allclose(out, ref, atol=2e-3, rtol=2e-3), \
        float(jnp.max(jnp.abs(out - ref)))

    print("KERNEL_OK")
</pallas_src>

<mosaic_0001>
module attributes {stable_mosaic.version = 11 : i64} {
  func.func @tokenizer_kernel(%arg0: i32, %arg1: memref<1x256x27xbf16, #tpu.memory_space<vmem>>, %arg2: memref<27x64xbf16, #tpu.memory_space<vmem>>, %arg3: memref<1x1x8x8x64xf32, #tpu.memory_space<vmem>>, %arg4: memref<1x16x16x64xf32, #tpu.memory_space<vmem>>, %arg5: memref<1x8x16x64xf32, #tpu.memory_space<vmem>>) attributes {dimension_semantics = [#tpu.dimension_semantics<parallel>], iteration_bounds = array<i64: 2>, scalar_prefetch = 0 : i64, scratch_operands = 2 : i64, tpu.core_type = #tpu.core_type<tc>, window_params = [{transform_indices = @transform_0, window_bounds = array<i64: 1, 256, 27>}, {pipeline_mode = #tpu.pipeline_mode<synchronous>, transform_indices = @transform_1, window_bounds = array<i64: 27, 64>}, {transform_indices = @transform_2, window_bounds = array<i64: 1, 1, 8, 8, 64>}]} {
    %c0 = arith.constant 0 : index
    %c0_0 = arith.constant 0 : index
    %c0_1 = arith.constant 0 : index
    %0 = vector.load %arg1[%c0, %c0_0, %c0_1] : memref<1x256x27xbf16, #tpu.memory_space<vmem>>, vector<1x256x27xbf16>
    %1 = vector.shape_cast %0 : vector<1x256x27xbf16> to vector<256x27xbf16>
    %c0_2 = arith.constant 0 : index
    %c0_3 = arith.constant 0 : index
    %2 = vector.load %arg2[%c0_2, %c0_3] : memref<27x64xbf16, #tpu.memory_space<vmem>>, vector<27x64xbf16>
    %cst = arith.constant dense<0.000000e+00> : vector<256x64xf32>
    %3 = tpu.matmul %1, %2, %cst {dimension_numbers = #tpu.dot_dimension_numbers<[1], [0], [0], [1], [0, 0, 1, 1], [], []>} : vector<256x27xbf16>, vector<27x64xbf16>, vector<256x64xf32> -> vector<256x64xf32>
    %4 = vector.shape_cast %3 : vector<256x64xf32> to vector<1x16x16x64xf32>
    %c0_4 = arith.constant 0 : index
    %c0_5 = arith.constant 0 : index
    %c0_6 = arith.constant 0 : index
    %c0_7 = arith.constant 0 : index
    %5 = vector.load %arg4[%c0_4, %c0_5, %c0_6, %c0_7] : memref<1x16x16x64xf32, #tpu.memory_space<vmem>>, vector<1x16x16x64xf32>
    tpu.vector_store %arg4[%c0_4, %c0_5, %c0_6, %c0_7], %4 {strides = array<i32>} : memref<1x16x16x64xf32, #tpu.memory_space<vmem>>, vector<1x16x16x64xf32>,
    %c0_8 = arith.constant 0 : index
    %c0_9 = arith.constant 0 : index
    %c0_10 = arith.constant 0 : index
    %c0_11 = arith.constant 0 : index
    %6 = tpu.strided_load %arg4[%c0_8, %c0_9, %c0_10, %c0_11] {strides = array<i32: 1, 2, 1, 1>} : memref<1x16x16x64xf32, #tpu.memory_space<vmem>>, vector<1x8x16x64xf32>
    %c0_12 = arith.constant 0 : index
    %c0_13 = arith.constant 0 : index
    %c0_14 = arith.constant 0 : index
    %c0_15 = arith.constant 0 : index
    %7 = vector.load %arg5[%c0_12, %c0_13, %c0_14, %c0_15] : memref<1x8x16x64xf32, #tpu.memory_space<vmem>>, vector<1x8x16x64xf32>
    tpu.vector_store %arg5[%c0_12, %c0_13, %c0_14, %c0_15], %6 {strides = array<i32>} : memref<1x8x16x64xf32, #tpu.memory_space<vmem>>, vector<1x8x16x64xf32>,
    %c0_16 = arith.constant 0 : index
    %c1 = arith.constant 1 : index
    %c0_17 = arith.constant 0 : index
    %c0_18 = arith.constant 0 : index
    %8 = tpu.strided_load %arg4[%c0_16, %c1, %c0_17, %c0_18] {strides = array<i32: 1, 2, 1, 1>} : memref<1x16x16x64xf32, #tpu.memory_space<vmem>>, vector<1x7x16x64xf32>
    %c0_19 = arith.constant 0 : index
    %c1_20 = arith.constant 1 : index
    %c0_21 = arith.constant 0 : index
    %c0_22 = arith.constant 0 : index
    %9 = vector.load %arg5[%c0_19, %c1_20, %c0_21, %c0_22] : memref<1x8x16x64xf32, #tpu.memory_space<vmem>>, vector<1x7x16x64xf32>
    %10 = arith.maximumf %9, %8 : vector<1x7x16x64xf32>
    %c0_23 = arith.constant 0 : index
    %c1_24 = arith.constant 1 : index
    %c0_25 = arith.constant 0 : index
    %c0_26 = arith.constant 0 : index
    %11 = vector.load %arg5[%c0_23, %c1_24, %c0_25, %c0_26] : memref<1x8x16x64xf32, #tpu.memory_space<vmem>>, vector<1x7x16x64xf32>
    tpu.vector_store %arg5[%c0_23, %c1_24, %c0_25, %c0_26], %10 {strides = array<i32>} : memref<1x8x16x64xf32, #tpu.memory_space<vmem>>, vector<1x7x16x64xf32>,
    %c0_27 = arith.constant 0 : index
    %c1_28 = arith.constant 1 : index
    %c0_29 = arith.constant 0 : index
    %c0_30 = arith.constant 0 : index
    %12 = tpu.strided_load %arg4[%c0_27, %c1_28, %c0_29, %c0_30] {strides = array<i32: 1, 2, 1, 1>} : memref<1x16x16x64xf32, #tpu.memory_space<vmem>>, vector<1x8x16x64xf32>
    %c0_31 = arith.constant 0 : index
    %c0_32 = arith.constant 0 : index
    %c0_33 = arith.constant 0 : index
    %c0_34 = arith.constant 0 : index
    %13 = vector.load %arg5[%c0_31, %c0_32, %c0_33, %c0_34] : memref<1x8x16x64xf32, #tpu.memory_space<vmem>>, vector<1x8x16x64xf32>
    %14 = arith.maximumf %13, %12 : vector<1x8x16x64xf32>
    %c0_35 = arith.constant 0 : index
    %c0_36 = arith.constant 0 : index
    %c0_37 = arith.constant 0 : index
    %c0_38 = arith.constant 0 : index
    %15 = vector.load %arg5[%c0_35, %c0_36, %c0_37, %c0_38] : memref<1x8x16x64xf32, #tpu.memory_space<vmem>>, vector<1x8x16x64xf32>
    tpu.vector_store %arg5[%c0_35, %c0_36, %c0_37, %c0_38], %14 {strides = array<i32>} : memref<1x8x16x64xf32, #tpu.memory_space<vmem>>, vector<1x8x16x64xf32>,
    %c0_39 = arith.constant 0 : index
    %c0_40 = arith.constant 0 : index
    %c0_41 = arith.constant 0 : index
    %c0_42 = arith.constant 0 : index
    %16 = tpu.strided_load %arg5[%c0_39, %c0_40, %c0_41, %c0_42] {strides = array<i32: 1, 1, 2, 1>} : memref<1x8x16x64xf32, #tpu.memory_space<vmem>>, vector<1x8x8x64xf32>
    %c0_43 = arith.constant 0 : index
    %c0_44 = arith.constant 0 : index
    %c0_45 = arith.constant 0 : index
    %c0_46 = arith.constant 0 : index
    %c0_47 = arith.constant 0 : index
    %17 = vector.load %arg3[%c0_43, %c0_44, %c0_45, %c0_46, %c0_47] : memref<1x1x8x8x64xf32, #tpu.memory_space<vmem>>, vector<1x1x8x8x64xf32>
    %18 = vector.shape_cast %17 : vector<1x1x8x8x64xf32> to vector<1x8x8x64xf32>
    %19 = vector.shape_cast %16 : vector<1x8x8x64xf32> to vector<1x1x8x8x64xf32>
    tpu.vector_store %arg3[%c0_43, %c0_44, %c0_45, %c0_46, %c0_47], %19 {strides = array<i32>} : memref<1x1x8x8x64xf32, #tpu.memory_space<vmem>>, vector<1x1x8x8x64xf32>,
    %c0_48 = arith.constant 0 : index
    %c0_49 = arith.constant 0 : index
    %c1_50 = arith.constant 1 : index
    %c0_51 = arith.constant 0 : index
    %20 = tpu.strided_load %arg5[%c0_48, %c0_49, %c1_50, %c0_51] {strides = array<i32: 1, 1, 2, 1>} : memref<1x8x16x64xf32, #tpu.memory_space<vmem>>, vector<1x8x7x64xf32>
    %c0_52 = arith.constant 0 : index
    %c0_53 = arith.constant 0 : index
    %c0_54 = arith.constant 0 : index
    %c1_55 = arith.constant 1 : index
    %c0_56 = arith.constant 0 : index
    %21 = vector.load %arg3[%c0_52, %c0_53, %c0_54, %c1_55, %c0_56] : memref<1x1x8x8x64xf32, #tpu.memory_space<vmem>>, vector<1x1x8x7x64xf32>
    %22 = vector.shape_cast %21 : vector<1x1x8x7x64xf32> to vector<1x8x7x64xf32>
    %23 = arith.maximumf %22, %20 : vector<1x8x7x64xf32>
    %c0_57 = arith.constant 0 : index
    %c0_58 = arith.constant 0 : index
    %c0_59 = arith.constant 0 : index
    %c1_60 = arith.constant 1 : index
    %c0_61 = arith.constant 0 : index
    %24 = vector.load %arg3[%c0_57, %c0_58, %c0_59, %c1_60, %c0_61] : memref<1x1x8x8x64xf32, #tpu.memory_space<vmem>>, vector<1x1x8x7x64xf32>
    %25 = vector.shape_cast %24 : vector<1x1x8x7x64xf32> to vector<1x8x7x64xf32>
    %26 = vector.shape_cast %23 : vector<1x8x7x64xf32> to vector<1x1x8x7x64xf32>
    tpu.vector_store %arg3[%c0_57, %c0_58, %c0_59, %c1_60, %c0_61], %26 {strides = array<i32>} : memref<1x1x8x8x64xf32, #tpu.memory_space<vmem>>, vector<1x1x8x7x64xf32>,
    %c0_62 = arith.constant 0 : index
    %c0_63 = arith.constant 0 : index
    %c1_64 = arith.constant 1 : index
    %c0_65 = arith.constant 0 : index
    %27 = tpu.strided_load %arg5[%c0_62, %c0_63, %c1_64, %c0_65] {strides = array<i32: 1, 1, 2, 1>} : memref<1x8x16x64xf32, #tpu.memory_space<vmem>>, vector<1x8x8x64xf32>
    %c0_66 = arith.constant 0 : index
    %c0_67 = arith.constant 0 : index
    %c0_68 = arith.constant 0 : index
    %c0_69 = arith.constant 0 : index
    %c0_70 = arith.constant 0 : index
    %28 = vector.load %arg3[%c0_66, %c0_67, %c0_68, %c0_69, %c0_70] : memref<1x1x8x8x64xf32, #tpu.memory_space<vmem>>, vector<1x1x8x8x64xf32>
    %29 = vector.shape_cast %28 : vector<1x1x8x8x64xf32> to vector<1x8x8x64xf32>
    %30 = arith.maximumf %29, %27 : vector<1x8x8x64xf32>
    %c0_71 = arith.constant 0 : index
    %c0_72 = arith.constant 0 : index
    %c0_73 = arith.constant 0 : index
    %c0_74 = arith.constant 0 : index
    %c0_75 = arith.constant 0 : index
    %31 = vector.load %arg3[%c0_71, %c0_72, %c0_73, %c0_74, %c0_75] : memref<1x1x8x8x64xf32, #tpu.memory_space<vmem>>, vector<1x1x8x8x64xf32>
    %32 = vector.shape_cast %31 : vector<1x1x8x8x64xf32> to vector<1x8x8x64xf32>
    %33 = vector.shape_cast %30 : vector<1x8x8x64xf32> to vector<1x1x8x8x64xf32>
    tpu.vector_store %arg3[%c0_71, %c0_72, %c0_73, %c0_74, %c0_75], %33 {strides = array<i32>} : memref<1x1x8x8x64xf32, #tpu.memory_space<vmem>>, vector<1x1x8x8x64xf32>,
    return
  }
  func.func @transform_0(%arg0: i32) -> (i32, i32, i32) {
    %c0_i32 = arith.constant 0 : i32
    %c0_i32_0 = arith.constant 0 : i32
    %c0_i32_1 = arith.constant 0 : i32
    return %arg0, %c0_i32, %c0_i32_0 : i32, i32, i32
  }
  func.func @transform_1(%arg0: i32) -> (i32, i32) {
    %c0_i32 = arith.constant 0 : i32
    %c0_i32_0 = arith.constant 0 : i32
    %c0_i32_1 = arith.constant 0 : i32
    return %c0_i32, %c0_i32_0 : i32, i32
  }
  func.func @transform_2(%arg0: i32) -> (i32, i32, i32, i32, i32) {
    %c0_i32 = arith.constant 0 : i32
    %c0_i32_0 = arith.constant 0 : i32
    %c0_i32_1 = arith.constant 0 : i32
    %c0_i32_2 = arith.constant 0 : i32
    %c0_i32_3 = arith.constant 0 : i32
    return %arg0, %c0_i32, %c0_i32_0, %c0_i32_1, %c0_i32_2 : i32, i32, i32, i32, i32
  }
}

</mosaic_0001>

<bundles_post_ra>
// kernel: tokenizer_forward.1
= control target key start
LH: loop header
LB: loop body
LE: loop exit
PB: predicated region body
PF: predicated region fallthrough
CT: control target
= control target key end

     0   :  { %7 = vsyncpa [#allocation5], 0  ;;  %s1327_s0 = inlined_call_operand.vmem [shape: bf16[2,256,27], index: 0, kind: input, shape index: {}]   ;;  %s1328_s1 = inlined_call_operand.vmem [shape: bf16[27,64], index: 1, kind: input, shape index: {}]   ;;  %s1329_s2 = inlined_call_operand.hbm [shape: f32[2,1,8,8,64], index: 2, kind: output, shape index: {}]  }
   0x1   :  { %9 = vsyncpa [#allocation5 + $0x1], 0  ;;  %s1026_s9 = smov 0   ;;  %s1028_s10 = smov 0  }
   0x2   :  { %s1030_s11 = smov 0   ;;  %s1032_s12 = smov 0  }
   0x3 LB: > { %s1047_s13 = sadd.s32 4294967295, %s1006_s12   ;;  %s776_s14 = sadd.s32 4294967294, %s1006_s12   ;;  %s1006_s12 = sphi %s1032_s12, %s1335_s12   ;;  %s1002_s11 = sphi %s1030_s11, %s1334_s11   ;;  %s998_s10 = sphi %s1028_s10, %s1333_s10   ;;  %s994_s9 = sphi %s1026_s9, %s1332_s9  }
   0x4   : > { %s1051_s15 = sadd.s32 1, %s1006_s12   ;;  %s69_s16 = sadd.s32 1, %s1002_s11 }
   0x5   : > { %s66_s17 = ssub.s32 %s1006_s12, %s1051_s15  ;;  %p79_p0 = scmp.ne.s32.totalorder %s1002_s11, %s998_s10 }
   0x6   : > { %p67_p1 = scmp.eq.s32.totalorder %s66_s17, 0  ;;  %p80_p2 = scmp.eq.s32.totalorder %s1047_s13, 1 }
   0x7   : > { %p85_p3 = scmp.ne.s32.totalorder %s998_s10, %s994_s9  ;;  %p86_p4 = scmp.eq.s32.totalorder %s776_s14, 1 }
   0x8   : > { %s1062_s18 = scalar_select %p67_p1, %s1002_s11, %s69_s16  }
   0x9   : > { %p1064_p5 = por %p80_p2, %p79_p0  ;;  %p1068_p6 = por %p86_p4, %p85_p3 }
   0xa   : > { %p779_p7 = scmp.ge.s32.totalorder %s1006_s12, 1  ;;  %p115_p8 = scmp.lt.s32.totalorder %s1006_s12, 3 }
   0xc   : > { %p116_p9 = pnand %p779_p7, %p115_p8 }
   0xd   : > { %p137_p10 = scmp.lt.s32.totalorder (!%p116_p9), %s1047_s13, 1  ;;  %s134_s4 = sand.u32 (!%p116_p9), 1, %s998_s10  }
   0xe   : > { %119 = sbr.rel (%p116_p9) target bundleno = 291 (0x123), region = 28  ;;  %s780_s5 = sshll.u32 (!%p116_p9), %s134_s4, 6 }
   0xf   : > { %s1159_s6 = scalar_lea.vmem (!%p116_p9), [#allocation4], %s780_s5  ;;  %s895_s7 = sshll.u32 (!%p116_p9), %s1047_s13, 6 }
  0x10   : > { %s710_s16 = scalar_lea.hbm (!%p116_p9), %s1329_s2, %s895_s7  ;;  %s711_s17 = sshll.u32 (!%p116_p9), %s1159_s6, 4  ;;  %s712_s17 = int_to_ptr.vmem [resolvable:$true] %s711_s17 }
  0x11   : > { %s713_s21 = sshll.u32 (!%p116_p9), %s710_s16, 4  ;;  %s714_s21 = int_to_ptr.hbm [resolvable:$true] %s713_s21 }
  0x12   : > { %s958_s22 = sshra.s32 (!%p116_p9), %s714_s21, 4  ;;  %s959_s22 = int_to_ptr.hbm [resolvable:$true] %s958_s22 }
  0x13   : > { %v853_v0 = vld [vmem:[%s1328_s1 + $0x8] sm:$0xf]  ;;  %v894_v1 = vld [vmem:[%s1328_s1 + $0x8] sm:$0x30]  ;;  %vm319_vm0 = vcmask 1044480   ;;  %vm320_vm1 = vcmask 1045504   ;;  %p965_p0 = scmp.lt.s32.totalorder %s959_s22, %s1329_s2 }
  0x14   : > { %v854_v2 = vor.u32 %v894_v1, %v853_v0  ;;  %v1008_v3 = vmov 65535   ;;  %s138_s25 = scalar_select %p137_p10, %s1047_s13, 1  ;;  %v893_v7 = vld [vmem:[%s1328_s1] sm:$0xff]  ;;  %vm270_vm2 = vcmask 220160   ;;  %vm415_vm3 = vcmask 523264  }
  0x15   : > { %v321_v4 = vsel %vm319_vm0, 4294967295, %v1008_v3  ;;  %vm657_vm4 = vcmask 522240   ;;  %s699_s13 = scalar_lea.sflag [#allocation5], %s134_s4  ;;  %s960_s23 = scalar_lea.hbm %s959_s22, 64 }
  0x16   : > { %v322_v5 = vsel %vm320_vm1, %v321_v4, 0  ;;  %s876_s26 = sshll.u32 %s138_s25, 7  ;;  %p961_p11 = scmp.ne.s32.totalorder %s959_s22, %s960_s23 }
  0x17   : > { %v324_v6 = vand.u32 %v854_v2, %v322_v5  ;;  %s1088_s3 = scalar_lea.vmem %s1327_s0, %s876_s26  ;;  %s964_s26 = scalar_lea.hbm %s1329_s2, 128 }
  0x18   : > { %v877_v8 = vld [vmem:[%s1088_s3] sm:$0xff]  ;;  %v878_v12 = vld [vmem:[%s1088_s3 + $0x8] sm:$0xff]  ;;  %v879_v16 = vld [vmem:[%s1088_s3 + $0x10] sm:$0xff]  ;;  %p962_p12 = pnand %p961_p11, %p1064_p5  ;;  %p966_p1 = scmp.lt.s32.totalorder %s964_s26, %s960_s23 }
  0x19   : > { %332 = vmatpush.bf16.msra.mxu0 %v324_v6  ;;  %896 = vmatpush.bf16.msra.mxu1 %v324_v6  ;;  %v881_v9 = vld [vmem:[%s1088_s3 + $0x20] sm:$0xff]  ;;  %v882_v13 = vld [vmem:[%s1088_s3 + $0x28] sm:$0xff]  ;;  %v883_v17 = vld [vmem:[%s1088_s3 + $0x30] sm:$0xff] }
  0x1a   : > { %897 = vmatpush.bf16.msra.mxu2 %v324_v6  ;;  %898 = vmatpush.bf16.msra.mxu3 %v324_v6  ;;  %v885_v10 = vld [vmem:[%s1088_s3 + $0x40] sm:$0xff]  ;;  %v886_v14 = vld [vmem:[%s1088_s3 + $0x48] sm:$0xff]  ;;  %v887_v18 = vld [vmem:[%s1088_s3 + $0x50] sm:$0xff]  ;;  %p963_p13 = pneg %p962_p12  ;;  %p967_p2 = por %p966_p1, %p965_p0 }
  0x1b   : > { %v889_v11 = vld [vmem:[%s1088_s3 + $0x60] sm:$0xff]  ;;  %v890_v15 = vld [vmem:[%s1088_s3 + $0x68] sm:$0xff]  ;;  %v891_v19 = vld [vmem:[%s1088_s3 + $0x70] sm:$0xff] }
  0x1c   : > { %v880_v20 = vld [vmem:[%s1088_s3 + $0x18] sm:$0xff]  ;;  %p968_p3 = pnand %p967_p2, %p963_p13 }
  0x1d   : > { %333 = vmatpush.bf16.msra.mxu0 %v893_v7  ;;  %899 = vmatpush.bf16.msra.mxu1 %v893_v7  ;;  %v884_v21 = vld [vmem:[%s1088_s3 + $0x38] sm:$0xff] }
  0x1e   : > { %900 = vmatpush.bf16.msra.mxu2 %v893_v7  ;;  %901 = vmatpush.bf16.msra.mxu3 %v893_v7  ;;  %v888_v22 = vld [vmem:[%s1088_s3 + $0x58] sm:$0xff] }
  0x1f   : > { %v892_v23 = vld [vmem:[%s1088_s3 + $0x78] sm:$0xff] }
  0x20   : > { %855 = vmatmul.msk.bf16.vlgmr.msra.gmra.mxu0 %vm270_vm2, %v877_v8  ;;  %859 = vmatmul.msk.bf16.vlgmr.msra.gmra.mxu1 %vm270_vm2, %v881_v9 }
  0x21   : > { %863 = vmatmul.msk.bf16.vlgmr.msra.gmra.mxu2 %vm270_vm2, %v885_v10  ;;  %867 = vmatmul.msk.bf16.vlgmr.msra.gmra.mxu3 %vm270_vm2, %v889_v11 }
  0x30   : > { %856 = vmatmul.msk.bf16.gmra.mxu0 %vm270_vm2, %v878_v12  ;;  %860 = vmatmul.msk.bf16.gmra.mxu1 %vm270_vm2, %v882_v13 }
  0x31   : > { %864 = vmatmul.msk.bf16.gmra.mxu2 %vm270_vm2, %v886_v14  ;;  %868 = vmatmul.msk.bf16.gmra.mxu3 %vm270_vm2, %v890_v15 }
  0x40   : > { %857 = vmatmul.msk.bf16.gmra.mxu0 %vm270_vm2, %v879_v16  ;;  %861 = vmatmul.msk.bf16.gmra.mxu1 %vm270_vm2, %v883_v17 }
  0x41   : > { %865 = vmatmul.msk.bf16.gmra.mxu2 %vm270_vm2, %v887_v18  ;;  %869 = vmatmul.msk.bf16.gmra.mxu3 %vm270_vm2, %v891_v19 }
  0x50   : > { %858 = vmatmul.msk.bf16.gmra.mxu0 %vm270_vm2, %v880_v20  ;;  %862 = vmatmul.msk.bf16.gmra.mxu1 %vm270_vm2, %v884_v21 }
  0x51   : > { %866 = vmatmul.msk.bf16.gmra.mxu2 %vm270_vm2, %v888_v22  ;;  %870 = vmatmul.msk.bf16.gmra.mxu3 %vm270_vm2, %v892_v23 }
  0x9d   : > { %v335_v24 = vpop.f32.mrf.mxu0  ;;  %v355_v25 = vpop.f32.mrf.mxu1 }
  0x9e   : > { %416 = vst.msk [vmem:[#allocation2] sm:$0xff] %vm415_vm3, %v335_v24 }
  0x9f   : > { %424 = vst.msk [vmem:[#allocation2 + $0x40] sm:$0xff] %vm415_vm3, %v355_v25 }
  0xa4   : > { %v375_v26 = vpop.f32.mrf.mxu2  ;;  %v395_v27 = vpop.f32.mrf.mxu3 }
  0xa5   : > { %v448_v28 = vld [vmem:[#allocation2] sm:$0xff]  ;;  %432 = vst.msk [vmem:[#allocation2 + $0x80] sm:$0xff] %vm415_vm3, %v375_v26  ;;  %v337_v29 = vpop.f32.mrf.mxu0  ;;  %v357_v30 = vpop.f32.mrf.mxu1 }
  0xa6   : > { %464 = vst.msk [vmem:[#allocation3] sm:$0xff] %vm415_vm3, %v448_v28  ;;  %v452_v31 = vld [vmem:[#allocation2 + $0x40] sm:$0xff] }
  0xa7   : > { %468 = vst.msk [vmem:[#allocation3 + $0x20] sm:$0xff] %vm415_vm3, %v452_v31 }
  0xa8   : > { %440 = vst.msk [vmem:[#allocation2 + $0xc0] sm:$0xff] %vm415_vm3, %v395_v27 }
  0xa9   : > { %417 = vst.msk [vmem:[#allocation2 + $0x8] sm:$0xff] %vm415_vm3, %v337_v29 }
  0xaa   : > { %425 = vst.msk [vmem:[#allocation2 + $0x48] sm:$0xff] %vm415_vm3, %v357_v30 }
  0xac   : > { %v456_v32 = vld [vmem:[#allocation2 + $0x80] sm:$0xff]  ;;  %v377_v33 = vpop.f32.mrf.mxu2  ;;  %v397_v34 = vpop.f32.mrf.mxu3 }
  0xad   : > { %472 = vst.msk [vmem:[#allocation3 + $0x40] sm:$0xff] %vm415_vm3, %v456_v32  ;;  %v340_v35 = vpop.f32.mrf.mxu0  ;;  %v360_v36 = vpop.f32.mrf.mxu1  ;;  %v554_v47 = vld [vmem:[#allocation3] sm:$0xff] }
  0xae   : > { %433 = vst.msk [vmem:[#allocation2 + $0x88] sm:$0xff] %vm415_vm3, %v377_v33  ;;  %v498_v30 = vld [vmem:[#allocation3 + $0x20] sm:$0xff] }
  0xaf   : > { %v460_v37 = vld [vmem:[#allocation2 + $0xc0] sm:$0xff]  ;;  %441 = vst.msk [vmem:[#allocation2 + $0xc8] sm:$0xff] %vm415_vm3, %v397_v34 }
  0xb0   : > { %476 = vst.msk [vmem:[#allocation3 + $0x60] sm:$0xff] %vm415_vm3, %v460_v37  ;;  %v449_v38 = vld [vmem:[#allocation2 + $0x8] sm:$0xff] }
  0xb1   : > { %465 = vst.msk [vmem:[#allocation3 + $0x8] sm:$0xff] %vm415_vm3, %v449_v38  ;;  %v453_v39 = vld [vmem:[#allocation2 + $0x48] sm:$0xff] }
  0xb2   : > { %469 = vst.msk [vmem:[#allocation3 + $0x28] sm:$0xff] %vm415_vm3, %v453_v39 }
  0xb3   : > { %418 = vst.msk [vmem:[#allocation2 + $0x10] sm:$0xff] %vm415_vm3, %v340_v35 }
  0xb4   : > { %426 = vst.msk [vmem:[#allocation2 + $0x50] sm:$0xff] %vm415_vm3, %v360_v36  ;;  %v380_v40 = vpop.f32.mrf.mxu2  ;;  %v400_v41 = vpop.f32.mrf.mxu3  ;;  %v502_v34 = vld [vmem:[#allocation3 + $0x40] sm:$0xff] }
  0xb5   : > { %v457_v42 = vld [vmem:[#allocation2 + $0x88] sm:$0xff]  ;;  %434 = vst.msk [vmem:[#allocation2 + $0x90] sm:$0xff] %vm415_vm3, %v380_v40  ;;  %v342_v43 = vpop.f32.mrf.mxu0  ;;  %v362_v44 = vpop.f32.mrf.mxu1 }
  0xb6   : > { %473 = vst.msk [vmem:[#allocation3 + $0x48] sm:$0xff] %vm415_vm3, %v457_v42  ;;  %v461_v45 = vld [vmem:[#allocation2 + $0xc8] sm:$0xff] }
  0xb7   : > { %477 = vst.msk [vmem:[#allocation3 + $0x68] sm:$0xff] %vm415_vm3, %v461_v45 }
  0xb8   : > { %442 = vst.msk [vmem:[#allocation2 + $0xd0] sm:$0xff] %vm415_vm3, %v400_v41  ;;  %v555_v54 = vld [vmem:[#allocation3 + $0x8] sm:$0xff] }
  0xb9   : > { %419 = vst.msk [vmem:[#allocation2 + $0x18] sm:$0xff] %vm415_vm3, %v342_v43 }
  0xba   : > { %v481_v46 = vld [vmem:[#allocation2 + $0x10] sm:$0xff]  ;;  %427 = vst.msk [vmem:[#allocation2 + $0x58] sm:$0xff] %vm415_vm3, %v362_v44 }
  0xbb   : > { %v570_v48 = vmax.f32 %v554_v47, %v481_v46  ;;  %v1166_v5 = vld [vmem:[#allocation2 + $0x50] sm:$0xff] }
  0xbc   : > { %v382_v49 = vpop.f32.mrf.mxu2  ;;  %v402_v50 = vpop.f32.mrf.mxu3  ;;  %v1173_v12 = vld [vmem:[#allocation2 + $0x90] sm:$0xff] }
  0xbd   : > { %586 = vst.msk [vmem:[#allocation3] sm:$0xff] %vm415_vm3, %v570_v48  ;;  %v345_v51 = vpop.f32.mrf.mxu0  ;;  %v365_v52 = vpop.f32.mrf.mxu1 }
  0xbe   : > { %435 = vst.msk [vmem:[#allocation2 + $0x98] sm:$0xff] %vm415_vm3, %v382_v49 }
  0xbf   : > { %443 = vst.msk [vmem:[#allocation2 + $0xd8] sm:$0xff] %vm415_vm3, %v402_v50  ;;  %v1176_v14 = vld [vmem:[#allocation2 + $0xd0] sm:$0xff] }
  0xc0   : > { %v482_v53 = vld [vmem:[#allocation2 + $0x18] sm:$0xff]  ;;  %420 = vst.msk [vmem:[#allocation2 + $0x20] sm:$0xff] %vm415_vm3, %v345_v51  ;;  %v499_v51 = vld [vmem:[#allocation3 + $0x28] sm:$0xff] }
  0xc1   : > { %v571_v55 = vmax.f32 %v555_v54, %v482_v53  ;;  %428 = vst.msk [vmem:[#allocation2 + $0x60] sm:$0xff] %vm415_vm3, %v365_v52  ;;  %v1186_v25 = vld [vmem:[#allocation2 + $0x58] sm:$0xff] }
  0xc3   : > { %587 = vst.msk [vmem:[#allocation3 + $0x8] sm:$0xff] %vm415_vm3, %v571_v55 }
  0xc4   : > { %v385_v56 = vpop.f32.mrf.mxu2  ;;  %v405_v57 = vpop.f32.mrf.mxu3 }
  0xc5   : > { %436 = vst.msk [vmem:[#allocation2 + $0xa0] sm:$0xff] %vm415_vm3, %v385_v56  ;;  %v347_v58 = vpop.f32.mrf.mxu0  ;;  %v367_v60 = vpop.f32.mrf.mxu1  ;;  %v1195_v38 = vld [vmem:[#allocation2 + $0x98] sm:$0xff] }
  0xc6   : > { %444 = vst.msk [vmem:[#allocation2 + $0xe0] sm:$0xff] %vm415_vm3, %v405_v57  ;;  %v1198_v41 = vld [vmem:[#allocation2 + $0xd8] sm:$0xff] }
  0xc7   : > { %v450_v59 = vld [vmem:[#allocation2 + $0x20] sm:$0xff]  ;;  %421 = vst.msk [vmem:[#allocation2 + $0x28] sm:$0xff] %vm415_vm3, %v347_v58 }
  0xc8   : > { %466 = vst.msk [vmem:[#allocation3 + $0x10] sm:$0xff] %vm415_vm3, %v450_v59  ;;  %v454_v61 = vld [vmem:[#allocation2 + $0x60] sm:$0xff] }
  0xc9   : > { %470 = vst.msk [vmem:[#allocation3 + $0x30] sm:$0xff] %vm415_vm3, %v454_v61  ;;  %v503_v61 = vld [vmem:[#allocation3 + $0x48] sm:$0xff] }
  0xca   : > { %429 = vst.msk [vmem:[#allocation2 + $0x68] sm:$0xff] %vm415_vm3, %v367_v60  ;;  %v602_v62 = vld [vmem:[#allocation3] ss:$2 sm:$0xff] }
  0xcb   : > { %617 = vst.msk [vmem:[%s1159_s6] sm:$0xff] %vm415_vm3, %v602_v62 }
  0xcc   : > { %v458_v63 = vld [vmem:[#allocation2 + $0xa0] sm:$0xff]  ;;  %v387_v1 = vpop.f32.mrf.mxu2  ;;  %v407_v3 = vpop.f32.mrf.mxu3 }
  0xcd   : > { %474 = vst.msk [vmem:[#allocation3 + $0x50] sm:$0xff] %vm415_vm3, %v458_v63  ;;  %v462_v0 = vld [vmem:[#allocation2 + $0xe0] sm:$0xff]  ;;  %v350_v8 = vpop.f32.mrf.mxu0  ;;  %v370_v11 = vpop.f32.mrf.mxu1 }
  0xce   : > { %478 = vst.msk [vmem:[#allocation3 + $0x70] sm:$0xff] %vm415_vm3, %v462_v0  ;;  %v451_v2 = vld [vmem:[#allocation2 + $0x28] sm:$0xff] }
  0xcf   : > { %v496_v4 = vld [vmem:[#allocation3 + $0x10] sm:$0xff]  ;;  %467 = vst.msk [vmem:[#allocation3 + $0x18] sm:$0xff] %vm415_vm3, %v451_v2 }
  0xd0   : > { %v510_v6 = vmax.f32 %v496_v4, %v481_v46  ;;  %v500_v7 = vld [vmem:[#allocation3 + $0x30] sm:$0xff]  ;;  %437 = vst.msk [vmem:[#allocation2 + $0xa8] sm:$0xff] %vm415_vm3, %v387_v1  ;;  %v506_v46 = vld [vmem:[#allocation3 + $0x60] sm:$0xff] }
  0xd1   : > { %v514_v9 = vmax.f32 %v500_v7, %v1166_v5  ;;  %v455_v10 = vld [vmem:[#allocation2 + $0x68] sm:$0xff]  ;;  %445 = vst.msk [vmem:[#allocation2 + $0xe8] sm:$0xff] %vm415_vm3, %v407_v3 }
  0xd2   : > { %524 = vst.msk [vmem:[#allocation3 + $0x10] sm:$0xff] %vm415_vm3, %v510_v6  ;;  %v641_v2 = vld [vmem:[%s1159_s6 + $0x1] sm:$0x7f] }
  0xd3   : > { %528 = vst.msk [vmem:[#allocation3 + $0x30] sm:$0xff] %vm415_vm3, %v514_v9  ;;  %v626_v6 = vld [vmem:[#allocation3 + $0x1] ss:$2 sm:$0x7f] }
  0xd4   : > { %v504_v13 = vld [vmem:[#allocation3 + $0x50] sm:$0xff]  ;;  %471 = vst.msk [vmem:[#allocation3 + $0x38] sm:$0xff] %vm415_vm3, %v455_v10  ;;  %v390_v22 = vpop.f32.mrf.mxu2  ;;  %v410_v52 = vpop.f32.mrf.mxu3 }
  0xd5   : > { %v518_v15 = vmax.f32 %v504_v13, %v1173_v12  ;;  %v508_v16 = vld [vmem:[#allocation3 + $0x70] sm:$0xff]  ;;  %422 = vst.msk [vmem:[#allocation2 + $0x30] sm:$0xff] %vm415_vm3, %v350_v8  ;;  %v352_v24 = vpop.f32.mrf.mxu0  ;;  %v372_v37 = vpop.f32.mrf.mxu1  ;;  %v649_v8 = vmax.f32 %v641_v2, %v626_v6 }
  0xd6   : > { %v522_v17 = vmax.f32 %v508_v16, %v1176_v14  ;;  %v497_v18 = vld [vmem:[#allocation3 + $0x18] sm:$0xff]  ;;  %430 = vst.msk [vmem:[#allocation2 + $0x70] sm:$0xff] %vm415_vm3, %v370_v11 }
  0xd7   : > { %532 = vst.msk [vmem:[#allocation3 + $0x50] sm:$0xff] %vm415_vm3, %v518_v15  ;;  %v511_v19 = vmax.f32 %v497_v18, %v482_v53  ;;  %v459_v20 = vld [vmem:[#allocation2 + $0xa8] sm:$0xff] }
  0xd8   : > { %536 = vst.msk [vmem:[#allocation3 + $0x70] sm:$0xff] %vm415_vm3, %v522_v17  ;;  %v463_v21 = vld [vmem:[#allocation2 + $0xe8] sm:$0xff] }
  0xd9   : > { %525 = vst.msk [vmem:[#allocation3 + $0x18] sm:$0xff] %vm415_vm3, %v511_v19  ;;  %v556_v23 = vld [vmem:[#allocation3 + $0x10] sm:$0xff]  ;;  %v507_v18 = vld [vmem:[#allocation3 + $0x68] sm:$0xff] }
  0xda   : > { %475 = vst.msk [vmem:[#allocation3 + $0x58] sm:$0xff] %vm415_vm3, %v459_v20  ;;  %v560_v27 = vld [vmem:[#allocation3 + $0x30] sm:$0xff] }
  0xdb   : > { %v501_v26 = vld [vmem:[#allocation3 + $0x38] sm:$0xff]  ;;  %479 = vst.msk [vmem:[#allocation3 + $0x78] sm:$0xff] %vm415_vm3, %v463_v21 }
  0xdc   : > { %v515_v28 = vmax.f32 %v501_v26, %v1186_v25  ;;  %v483_v29 = vld [vmem:[#allocation2 + $0x30] sm:$0xff]  ;;  %438 = vst.msk [vmem:[#allocation2 + $0xb0] sm:$0xff] %vm415_vm3, %v390_v22  ;;  %v392_v0 = vpop.f32.mrf.mxu2  ;;  %v412_v4 = vpop.f32.mrf.mxu3 }
  0xdd   : > { %v512_v31 = vmax.f32 %v498_v30, %v483_v29  ;;  %v572_v32 = vmax.f32 %v556_v23, %v483_v29  ;;  %v487_v33 = vld [vmem:[#allocation2 + $0x70] sm:$0xff]  ;;  %423 = vst.msk [vmem:[#allocation2 + $0x38] sm:$0xff] %vm415_vm3, %v352_v24 }
  0xde   : > { %529 = vst.msk [vmem:[#allocation3 + $0x38] sm:$0xff] %vm415_vm3, %v515_v28  ;;  %v516_v35 = vmax.f32 %v502_v34, %v487_v33  ;;  %v576_v36 = vmax.f32 %v560_v27, %v487_v33  ;;  %v564_v40 = vld [vmem:[#allocation3 + $0x50] sm:$0xff]  ;;  %v666_v28 = vld [vmem:[#allocation3 + $0x1] ss:$2 sm:$0xff] }
  0xdf   : > { %526 = vst.msk [vmem:[#allocation3 + $0x20] sm:$0xff] %vm415_vm3, %v512_v31  ;;  %v568_v9 = vld [vmem:[#allocation3 + $0x70] sm:$0xff] }
  0xe0   : > { %588 = vst.msk [vmem:[#allocation3 + $0x10] sm:$0xff] %vm415_vm3, %v572_v32  ;;  %v557_v47 = vld [vmem:[#allocation3 + $0x18] sm:$0xff] }
  0xe1   : > { %v505_v39 = vld [vmem:[#allocation3 + $0x58] sm:$0xff]  ;;  %530 = vst.msk [vmem:[#allocation3 + $0x40] sm:$0xff] %vm415_vm3, %v516_v35 }
  0xe2   : > { %v519_v42 = vmax.f32 %v505_v39, %v1195_v38  ;;  %v509_v43 = vld [vmem:[#allocation3 + $0x78] sm:$0xff]  ;;  %592 = vst.msk [vmem:[#allocation3 + $0x30] sm:$0xff] %vm415_vm3, %v576_v36 }
  0xe3   : > { %v523_v44 = vmax.f32 %v509_v43, %v1198_v41  ;;  %v491_v45 = vld [vmem:[#allocation2 + $0xb0] sm:$0xff]  ;;  %431 = vst.msk [vmem:[#allocation2 + $0x78] sm:$0xff] %vm415_vm3, %v372_v37 }
  0xe4   : > { %533 = vst.msk [vmem:[#allocation3 + $0x58] sm:$0xff] %vm415_vm3, %v519_v42  ;;  %v520_v48 = vmax.f32 %v506_v46, %v491_v45  ;;  %v580_v49 = vmax.f32 %v564_v40, %v491_v45  ;;  %v484_v50 = vld [vmem:[#allocation2 + $0x38] sm:$0xff] }
  0xe5   : > { %537 = vst.msk [vmem:[#allocation3 + $0x78] sm:$0xff] %vm415_vm3, %v523_v44  ;;  %v513_v53 = vmax.f32 %v499_v51, %v484_v50  ;;  %v573_v55 = vmax.f32 %v557_v47, %v484_v50  ;;  %v561_v58 = vld [vmem:[#allocation3 + $0x38] sm:$0xff] }
  0xe6   : > { %v558_v54 = vld [vmem:[#allocation3 + $0x20] sm:$0xff]  ;;  %534 = vst.msk [vmem:[#allocation3 + $0x60] sm:$0xff] %vm415_vm3, %v520_v48 }
  0xe7   : > { %v574_v56 = vmax.f32 %v558_v54, %v1166_v5  ;;  %596 = vst.msk [vmem:[#allocation3 + $0x50] sm:$0xff] %vm415_vm3, %v580_v49 }
  0xe8   : > { %v562_v57 = vld [vmem:[#allocation3 + $0x40] sm:$0xff]  ;;  %527 = vst.msk [vmem:[#allocation3 + $0x28] sm:$0xff] %vm415_vm3, %v513_v53 }
  0xe9   : > { %590 = vst.msk [vmem:[#allocation3 + $0x20] sm:$0xff] %vm415_vm3, %v574_v56  ;;  %v578_v59 = vmax.f32 %v562_v57, %v1173_v12 }
  0xea   : > { %589 = vst.msk [vmem:[#allocation3 + $0x18] sm:$0xff] %vm415_vm3, %v573_v55  ;;  %v488_v60 = vld [vmem:[#allocation2 + $0x78] sm:$0xff] }
  0xeb   : > { %594 = vst.msk [vmem:[#allocation3 + $0x40] sm:$0xff] %vm415_vm3, %v578_v59  ;;  %v517_v62 = vmax.f32 %v503_v61, %v488_v60  ;;  %v577_v63 = vmax.f32 %v561_v58, %v488_v60 }
  0xec   : > { %446 = vst.msk [vmem:[#allocation2 + $0xf0] sm:$0xff] %vm415_vm3, %v410_v52  ;;  %v569_v19 = vld [vmem:[#allocation3 + $0x78] sm:$0xff] }
  0xed   : > { %v566_v1 = vld [vmem:[#allocation3 + $0x60] sm:$0xff]  ;;  %531 = vst.msk [vmem:[#allocation3 + $0x48] sm:$0xff] %vm415_vm3, %v517_v62 }
  0xee   : > { %v582_v3 = vmax.f32 %v566_v1, %v1176_v14  ;;  %593 = vst.msk [vmem:[#allocation3 + $0x38] sm:$0xff] %vm415_vm3, %v577_v63  ;;  %v565_v14 = vld [vmem:[#allocation3 + $0x58] sm:$0xff] }
  0xef   : > { %v559_v5 = vld [vmem:[#allocation3 + $0x28] sm:$0xff]  ;;  %439 = vst.msk [vmem:[#allocation2 + $0xb8] sm:$0xff] %vm415_vm3, %v392_v0 }
  0xf0   : > { %598 = vst.msk [vmem:[#allocation3 + $0x60] sm:$0xff] %vm415_vm3, %v582_v3  ;;  %v575_v7 = vmax.f32 %v559_v5, %v1186_v25 }
  0xf1   : > { %447 = vst.msk [vmem:[#allocation2 + $0xf8] sm:$0xff] %vm415_vm3, %v412_v4  ;;  %v604_v10 = vld [vmem:[#allocation3 + $0x10] ss:$2 sm:$0xff]  ;;  %v628_v25 = vld [vmem:[#allocation3 + $0x11] ss:$2 sm:$0x7f] }
  0xf2   : > { %591 = vst.msk [vmem:[#allocation3 + $0x28] sm:$0xff] %vm415_vm3, %v575_v7  ;;  %v667_v43 = vld [vmem:[#allocation3 + $0x11] ss:$2 sm:$0xff] }
  0xf3   : > { %v552_v11 = vld [vmem:[#allocation2 + $0xf0] sm:$0xff]  ;;  %618 = vst.msk [vmem:[%s1159_s6 + $0x8] sm:$0xff] %vm415_vm3, %v604_v10 }
  0xf4   : > { %v563_v12 = vld [vmem:[#allocation3 + $0x48] sm:$0xff]  ;;  %v584_v13 = vmax.f32 %v568_v9, %v552_v11  ;;  %658 = vst.msk [vmem:[%s1159_s6 + $0x1] sm:$0x7f] %vm657_vm4, %v649_v8 }
  0xf5   : > { %v579_v15 = vmax.f32 %v563_v12, %v1195_v38  ;;  %v608_v16 = vld [vmem:[#allocation3 + $0x30] ss:$2 sm:$0xff]  ;;  %v632_v34 = vld [vmem:[#allocation3 + $0x31] ss:$2 sm:$0x7f] }
  0xf6   : > { %600 = vst.msk [vmem:[#allocation3 + $0x70] sm:$0xff] %vm415_vm3, %v584_v13  ;;  %v492_v17 = vld [vmem:[#allocation2 + $0xb8] sm:$0xff] }
  0xf7   : > { %595 = vst.msk [vmem:[#allocation3 + $0x48] sm:$0xff] %vm415_vm3, %v579_v15  ;;  %v521_v20 = vmax.f32 %v507_v18, %v492_v17  ;;  %v581_v21 = vmax.f32 %v565_v14, %v492_v17  ;;  %v669_v55 = vld [vmem:[#allocation3 + $0x31] ss:$2 sm:$0xff] }
  0xf8   : > { %v553_v22 = vld [vmem:[#allocation2 + $0xf8] sm:$0xff]  ;;  %620 = vst.msk [vmem:[%s1159_s6 + $0x18] sm:$0xff] %vm415_vm3, %v608_v16 }
  0xf9   : > { %535 = vst.msk [vmem:[#allocation3 + $0x68] sm:$0xff] %vm415_vm3, %v521_v20  ;;  %v585_v23 = vmax.f32 %v569_v19, %v553_v22  ;;  %v606_v24 = vld [vmem:[#allocation3 + $0x20] ss:$2 sm:$0xff]  ;;  %v630_v39 = vld [vmem:[#allocation3 + $0x21] ss:$2 sm:$0x7f] }
  0xfa   : > { %597 = vst.msk [vmem:[#allocation3 + $0x58] sm:$0xff] %vm415_vm3, %v581_v21  ;;  %v642_v26 = vld [vmem:[%s1159_s6 + $0x9] sm:$0x7f] }
  0xfb   : > { %601 = vst.msk [vmem:[#allocation3 + $0x78] sm:$0xff] %vm415_vm3, %v585_v23  ;;  %v650_v27 = vmax.f32 %v642_v26, %v628_v25  ;;  %v674_v29 = vld [vmem:[%s1159_s6] sm:$0xff] }
  0xfc   : > { %619 = vst.msk [vmem:[%s1159_s6 + $0x10] sm:$0xff] %vm415_vm3, %v606_v24  ;;  %v682_v30 = vmax.f32 %v674_v29, %v666_v28  ;;  %v668_v57 = vld [vmem:[#allocation3 + $0x21] ss:$2 sm:$0xff] }
  0xfd   : > { %659 = vst.msk [vmem:[%s1159_s6 + $0x9] sm:$0x7f] %vm657_vm4, %v650_v27 }
  0xfe   : > { %v610_v31 = vld [vmem:[#allocation3 + $0x40] ss:$2 sm:$0xff]  ;;  %690 = vst.msk [vmem:[%s1159_s6] sm:$0xff] %vm415_vm3, %v682_v30  ;;  %v634_v44 = vld [vmem:[#allocation3 + $0x41] ss:$2 sm:$0x7f] }
  0xff   : > { %621 = vst.msk [vmem:[%s1159_s6 + $0x20] sm:$0xff] %vm415_vm3, %v610_v31  ;;  %v644_v32 = vld [vmem:[%s1159_s6 + $0x19] sm:$0x7f]  ;;  %v670_v61 = vld [vmem:[#allocation3 + $0x41] ss:$2 sm:$0xff] }
 0x100   : > { %v567_v33 = vld [vmem:[#allocation3 + $0x68] sm:$0xff]  ;;  %v652_v37 = vmax.f32 %v644_v32, %v632_v34 }
 0x101   : > { %v583_v35 = vmax.f32 %v567_v33, %v1198_v41  ;;  %v612_v36 = vld [vmem:[#allocation3 + $0x50] ss:$2 sm:$0xff]  ;;  %v636_v48 = vld [vmem:[#allocation3 + $0x51] ss:$2 sm:$0x7f] }
 0x102   : > { %v616_v38 = vld [vmem:[#allocation3 + $0x70] ss:$2 sm:$0xff]  ;;  %622 = vst.msk [vmem:[%s1159_s6 + $0x28] sm:$0xff] %vm415_vm3, %v612_v36  ;;  %v640_v52 = vld [vmem:[#allocation3 + $0x71] ss:$2 sm:$0x7f] }
 0x103   : > { %599 = vst.msk [vmem:[#allocation3 + $0x68] sm:$0xff] %vm415_vm3, %v583_v35  ;;  %v643_v40 = vld [vmem:[%s1159_s6 + $0x11] sm:$0x7f] }
 0x104   : > { %624 = vst.msk [vmem:[%s1159_s6 + $0x38] sm:$0xff] %vm415_vm3, %v616_v38  ;;  %v651_v42 = vmax.f32 %v643_v40, %v630_v39  ;;  %v675_v41 = vld [vmem:[%s1159_s6 + $0x8] sm:$0xff]  ;;  %v671_v3 = vld [vmem:[#allocation3 + $0x51] ss:$2 sm:$0xff] }
 0x105   : > { %661 = vst.msk [vmem:[%s1159_s6 + $0x19] sm:$0x7f] %vm657_vm4, %v652_v37  ;;  %v683_v45 = vmax.f32 %v675_v41, %v667_v43  ;;  %v673_v6 = vld [vmem:[#allocation3 + $0x71] ss:$2 sm:$0xff] }
 0x106   : > { %v645_v46 = vld [vmem:[%s1159_s6 + $0x21] sm:$0x7f]  ;;  %660 = vst.msk [vmem:[%s1159_s6 + $0x11] sm:$0x7f] %vm657_vm4, %v651_v42 }
 0x107   : > { %v653_v47 = vmax.f32 %v645_v46, %v634_v44  ;;  %691 = vst.msk [vmem:[%s1159_s6 + $0x8] sm:$0xff] %vm415_vm3, %v683_v45 }
 0x109   : > { %v646_v49 = vld [vmem:[%s1159_s6 + $0x29] sm:$0x7f]  ;;  %662 = vst.msk [vmem:[%s1159_s6 + $0x21] sm:$0x7f] %vm657_vm4, %v653_v47 }
 0x10a   : > { %v614_v50 = vld [vmem:[#allocation3 + $0x60] ss:$2 sm:$0xff]  ;;  %v654_v51 = vmax.f32 %v646_v49, %v636_v48  ;;  %v638_v0 = vld [vmem:[#allocation3 + $0x61] ss:$2 sm:$0x7f] }
 0x10b   : > { %623 = vst.msk [vmem:[%s1159_s6 + $0x30] sm:$0xff] %vm415_vm3, %v614_v50  ;;  %v648_v53 = vld [vmem:[%s1159_s6 + $0x39] sm:$0x7f]  ;;  %v672_v9 = vld [vmem:[#allocation3 + $0x61] ss:$2 sm:$0xff] }
 0x10c   : > { %v656_v54 = vmax.f32 %v648_v53, %v640_v52  ;;  %663 = vst.msk [vmem:[%s1159_s6 + $0x29] sm:$0x7f] %vm657_vm4, %v654_v51  ;;  %v677_v56 = vld [vmem:[%s1159_s6 + $0x18] sm:$0xff] }
 0x10d   : > { %v676_v58 = vld [vmem:[%s1159_s6 + $0x10] sm:$0xff]  ;;  %v685_v59 = vmax.f32 %v677_v56, %v669_v55 }
 0x10e   : > { %665 = vst.msk [vmem:[%s1159_s6 + $0x39] sm:$0x7f] %vm657_vm4, %v656_v54  ;;  %v684_v60 = vmax.f32 %v676_v58, %v668_v57 }
 0x10f   : > { %693 = vst.msk [vmem:[%s1159_s6 + $0x18] sm:$0xff] %vm415_vm3, %v685_v59 }
 0x110   : > { %v678_v62 = vld [vmem:[%s1159_s6 + $0x20] sm:$0xff]  ;;  %692 = vst.msk [vmem:[%s1159_s6 + $0x10] sm:$0xff] %vm415_vm3, %v684_v60 }
 0x111   : > { %v686_v63 = vmax.f32 %v678_v62, %v670_v61 }
 0x112   : > { %v647_v1 = vld [vmem:[%s1159_s6 + $0x31] sm:$0x7f] }
 0x113   : > { %v655_v2 = vmax.f32 %v647_v1, %v638_v0  ;;  %v679_v4 = vld [vmem:[%s1159_s6 + $0x28] sm:$0xff]  ;;  %694 = vst.msk [vmem:[%s1159_s6 + $0x20] sm:$0xff] %vm415_vm3, %v686_v63 }
 0x114   : > { %v687_v5 = vmax.f32 %v679_v4, %v671_v3 }
 0x115   : > { %664 = vst.msk [vmem:[%s1159_s6 + $0x31] sm:$0x7f] %vm657_vm4, %v655_v2  ;;  %v681_v7 = vld [vmem:[%s1159_s6 + $0x38] sm:$0xff] }
 0x116   : > { %v689_v8 = vmax.f32 %v681_v7, %v673_v6  ;;  %695 = vst.msk [vmem:[%s1159_s6 + $0x28] sm:$0xff] %vm415_vm3, %v687_v5 }
 0x118   : > { %697 = vst.msk [vmem:[%s1159_s6 + $0x38] sm:$0xff] %vm415_vm3, %v689_v8 }
 0x11c   : > { %v680_v10 = vld [vmem:[%s1159_s6 + $0x30] sm:$0xff] }
 0x11d   : > { %v688_v11 = vmax.f32 %v680_v10, %v672_v9 }
 0x11f   : > { %696 = vst.msk [vmem:[%s1159_s6 + $0x30] sm:$0xff] %vm415_vm3, %v688_v11 }
 0x120   : > { %971 = shalt.err (!%p968_p3)
}
 0x121   : > { %s1009_s29 = smov 128   ;;  %s1010_s30 = smov 8  }
 0x122   : > { %902 = dma.vmem_to_hbm [thread:$0]  (%p1064_p5), %s712_s17, 1024, %s714_s21, %s699_s13, %s1009_s29, %s1009_s29, %s1010_s30  }
 0x123 PF: > { %p908_p4 = scmp.ge.s32.totalorder %s1006_s12, 2  ;;  %s728_s3 = sand.u32 1, %s994_s9  }
 0x124   : > { %s729_s4 = scalar_lea.sflag [#allocation5], %s728_s3 }
 0x125   : > { %p905_p7 = pnand %p908_p4, %p1068_p6 }
 0x127   : > { %p906_p8 = pneg %p905_p7 }
 0x129   : > { %989 = dma.done.wait (%p906_p8), %s729_s4, 1024  }
 0x12a   : > { %991 = vsyncadd (%p906_p8), %s729_s4, 4294966272  ;;  %p12_p9 = scmp.ge.s32.totalorder %s1051_s15, 4   ;;  %s1332_s9 = smov %s998_s10 }
 0x12b   : > { %s1333_s10 = smov %s1002_s11  ;;  %s1334_s11 = smov %s1062_s18 }
 0x12c   : > { %s1335_s12 = smov %s1051_s15  ;;  %14 = sbr.rel (!%p12_p9) target bundleno = 3 (0x3), region = 80 }
 0x131   :  { %735 = vsyncpa [#allocation5], 1 }
 0x132   :  { %737 = vsyncpa [#allocation5 + $0x1], 1 }

</bundles_post_ra>
